<compile_context>
chip_gen: v6e
topology: v6e:2x2x1
jax: 0.10.0
libtpu: 0.0.40
codegen_flags: <defaults>
</compile_context>

<pallas_src>
import jax
import jax.numpy as jnp
from jax.experimental import pallas as pl
from jax.experimental.pallas import tpu as pltpu


def _permute_kernel(eye_ref, x_ref, o_ref):
    # eye_ref: (C, C) f32 identity, x_ref: (1, THW, C), o_ref: (1, C, THW)
    x2 = x_ref[0].astype(jnp.float32)                     # (THW, C)
    # out[c, m] = sum_{c'} I[c, c'] * x2[m, c']  ==  x2.T   (exact: x 1.0, f32 acc)
    out = jax.lax.dot_general(
        eye_ref[...], x2,
        dimension_numbers=(((1,), (1,)), ((), ())),
        preferred_element_type=jnp.float32,
    )                                                      # (C, THW)
    o_ref[0] = out.astype(o_ref.dtype)


def _choose_hw_tile(HW: int) -> int:
    """Pick the HW tile size.

    Multiple of 128 (lane-dense output stores, 8-aligned input sublanes),
    capped at 4096 so the lane-padded f32 input buffer is ~2 MiB
    (double-buffered ~4 MiB: fits every generation's default scoped VMEM).
    """
    if HW <= 128:
        return HW                       # block == full dim, tiling rule satisfied
    for t in (4096, 2048, 1024, 512, 256, 128):
        if HW % t == 0:
            return t
    return 128                          # cdiv grid; masked partial last tile


def _nhwc_to_nchw(x):
    """(B, H, W, C) -> (B, C, H, W) with the channel relayout done in Pallas."""
    B, H, W, C = x.shape
    HW = H * W
    x2 = x.reshape(B, HW, C)                           # contiguous reshape (glue)
    eye = jnp.eye(C, dtype=jnp.float32)                # deterministic "parameter"

    thw = _choose_hw_tile(HW)
    n_t = pl.cdiv(HW, thw)
    itemsize = jnp.dtype(x.dtype).itemsize

    out_flat = pl.pallas_call(
        _permute_kernel,
        out_shape=jax.ShapeDtypeStruct((B, C, HW), x.dtype),
        grid=(B, n_t),
        in_specs=[
            # identity stays resident (same block every step)
            pl.BlockSpec((C, C), lambda b, t: (0, 0)),
            # one HW tile of one image per step
            pl.BlockSpec((1, thw, C), lambda b, t: (b, t, 0)),
        ],
        # lane-dense output tile: last dim is the HW tile (multiple of 128)
        out_specs=pl.BlockSpec((1, C, thw), lambda b, t: (b, 0, t)),
        compiler_params=pltpu.CompilerParams(
            # both axes parallel -> megacore sharding on v7x even when B == 1
            dimension_semantics=("parallel", "parallel"),
            vmem_limit_bytes=32 * 1024 * 1024,
        ),
        # pure bandwidth op: read + write of the whole image, zero real flops
        cost_estimate=pl.CostEstimate(
            flops=0,
            transcendentals=0,
            bytes_accessed=2 * B * HW * C * itemsize,
        ),
    )(eye, x2)

    return out_flat.reshape(B, C, H, W)                # contiguous reshape (glue)


def image_to_tensor(image, keepdim: bool = True):
    """JAX/Pallas equivalent of kornia.utils.image.image_to_tensor."""
    ndim = image.ndim
    if ndim > 4 or ndim < 2:
        raise ValueError("Input size must be a two, three or four dimensional array")

    if ndim == 2:
        # (H, W) -> (1, H, W): pure unsqueeze, no data movement.
        t = image[None]
    elif ndim == 3:
        # (H, W, C) -> (C, H, W) via the Pallas permutation kernel.
        t = _nhwc_to_nchw(image[None])[0]
    else:
        # (B, H, W, C) -> (B, C, H, W); keepdim is forced True in the reference.
        t = _nhwc_to_nchw(image)
        keepdim = True

    return t if keepdim else t[None]


class ImageToTensor:
    """Converts an HWC / BHWC image array to a CHW / BCHW tensor (Pallas-backed)."""

    def __init__(self, keepdim: bool = False):
        self.keepdim = keepdim

    def __call__(self, x):
        return image_to_tensor(x, keepdim=self.keepdim)


if __name__ == "__main__":
    key = jax.random.PRNGKey(0)
    k4, k3, k2 = jax.random.split(key, 3)

    # 4D case: (B, H, W, C) = (2, 16, 16, 4)
    x4 = jax.random.normal(k4, (2, 16, 16, 4), dtype=jnp.float32)
    # 3D case: (H, W, C) = (16, 16, 4)
    x3 = jax.random.normal(k3, (16, 16, 4), dtype=jnp.float32)
    # 2D case: (H, W) = (16, 16)
    x2 = jax.random.normal(k2, (16, 16), dtype=jnp.float32)

    mod = ImageToTensor(keepdim=False)

    y4 = jax.block_until_ready(mod(x4))
    y3 = jax.block_until_ready(mod(x3))
    y2 = jax.block_until_ready(mod(x2))

    ref4 = jnp.transpose(x4, (0, 3, 1, 2))            # (2, 4, 16, 16)  (keepdim forced)
    ref3 = jnp.transpose(x3, (2, 0, 1))[None]         # (1, 4, 16, 16)
    ref2 = x2[None, None]                             # (1, 1, 16, 16)

    assert y4.shape == ref4.shape and y4.dtype == ref4.dtype
    assert y3.shape == ref3.shape and y3.dtype == ref3.dtype
    assert y2.shape == ref2.shape and y2.dtype == ref2.dtype
    assert jnp.array_equal(y4, ref4)
    assert jnp.array_equal(y3, ref3)
    assert jnp.array_equal(y2, ref2)

    print("KERNEL_OK")
</pallas_src>

<mosaic_0001>
module attributes {stable_mosaic.version = 11 : i64} {
  func.func @_permute_kernel(%arg0: i32, %arg1: i32, %arg2: memref<4x4xf32, #tpu.memory_space<vmem>>, %arg3: memref<1x256x4xf32, #tpu.memory_space<vmem>>, %arg4: memref<1x4x256xf32, #tpu.memory_space<vmem>>) attributes {dimension_semantics = [#tpu.dimension_semantics<parallel>, #tpu.dimension_semantics<parallel>], iteration_bounds = array<i64: 2, 1>, scalar_prefetch = 0 : i64, scratch_operands = 0 : i64, tpu.core_type = #tpu.core_type<tc>, window_params = [{pipeline_mode = #tpu.pipeline_mode<synchronous>, transform_indices = @transform_0, window_bounds = array<i64: 4, 4>}, {transform_indices = @transform_1, window_bounds = array<i64: 1, 256, 4>}, {transform_indices = @transform_2, window_bounds = array<i64: 1, 4, 256>}]} {
    %c0 = arith.constant 0 : index
    %c0_0 = arith.constant 0 : index
    %c0_1 = arith.constant 0 : index
    %0 = vector.load %arg3[%c0, %c0_0, %c0_1] : memref<1x256x4xf32, #tpu.memory_space<vmem>>, vector<1x256x4xf32>
    %1 = vector.shape_cast %0 : vector<1x256x4xf32> to vector<256x4xf32>
    %c0_2 = arith.constant 0 : index
    %c0_3 = arith.constant 0 : index
    %2 = vector.load %arg2[%c0_2, %c0_3] : memref<4x4xf32, #tpu.memory_space<vmem>>, vector<4x4xf32>
    %cst = arith.constant dense<0.000000e+00> : vector<4x256xf32>
    %3 = tpu.matmul %2, %1, %cst {dimension_numbers = #tpu.dot_dimension_numbers<[1], [1], [0], [0], [0, 0, 1, 0], [], []>} : vector<4x4xf32>, vector<256x4xf32>, vector<4x256xf32> -> vector<4x256xf32>
    %c0_4 = arith.constant 0 : index
    %c0_5 = arith.constant 0 : index
    %c0_6 = arith.constant 0 : index
    %4 = vector.load %arg4[%c0_4, %c0_5, %c0_6] : memref<1x4x256xf32, #tpu.memory_space<vmem>>, vector<1x4x256xf32>
    %5 = vector.shape_cast %4 : vector<1x4x256xf32> to vector<4x256xf32>
    %6 = vector.shape_cast %3 : vector<4x256xf32> to vector<1x4x256xf32>
    tpu.vector_store %arg4[%c0_4, %c0_5, %c0_6], %6 {strides = array<i32>} : memref<1x4x256xf32, #tpu.memory_space<vmem>>, vector<1x4x256xf32>,
    return
  }
  func.func @transform_0(%arg0: i32, %arg1: i32) -> (i32, i32) {
    %c0_i32 = arith.constant 0 : i32
    %c0_i32_0 = arith.constant 0 : i32
    %c0_i32_1 = arith.constant 0 : i32
    return %c0_i32, %c0_i32_0 : i32, i32
  }
  func.func @transform_1(%arg0: i32, %arg1: i32) -> (i32, i32, i32) {
    %c0_i32 = arith.constant 0 : i32
    %c0_i32_0 = arith.constant 0 : i32
    return %arg0, %arg1, %c0_i32 : i32, i32, i32
  }
  func.func @transform_2(%arg0: i32, %arg1: i32) -> (i32, i32, i32) {
    %c0_i32 = arith.constant 0 : i32
    %c0_i32_0 = arith.constant 0 : i32
    return %arg0, %c0_i32, %arg1 : i32, i32, i32
  }
}

</mosaic_0001>

<bundles_post_ra>
// kernel: tpu_custom_call.1
= control target key start
LH: loop header
LB: loop body
LE: loop exit
PB: predicated region body
PF: predicated region fallthrough
CT: control target
= control target key end

     0   :  { %7 = vsyncpa [#allocation3], 0  ;;  %s880_s0 = inlined_call_operand.vmem [shape: f32[4,4], index: 0, kind: input, shape index: {}]   ;;  %s881_s1 = inlined_call_operand.vmem [shape: f32[2,256,4], index: 1, kind: input, shape index: {}]   ;;  %s882_s2 = inlined_call_operand.hbm [shape: f32[2,4,256], index: 2, kind: output, shape index: {}]  }
   0x1   :  { %9 = vsyncpa [#allocation3 + $0x1], 0  ;;  %s706_s9 = smov 0   ;;  %s708_s10 = smov 0  }
   0x2   :  { %s710_s11 = smov 0   ;;  %s712_s12 = smov 0  }
   0x3   :  { %s714_s13 = smov 0   ;;  %s716_s14 = smov 0  }
   0x4 LB: > { %s475_s15 = sadd.s32 4294967295, %s688_s14   ;;  %s476_s16 = sadd.s32 4294967294, %s688_s14   ;;  %s688_s14 = sphi %s716_s14, %s15_s14   ;;  %s684_s13 = sphi %s714_s13, %s889_s13   ;;  %s680_s12 = sphi %s712_s12, %s888_s12   ;;  %s676_s11 = sphi %s710_s11, %s887_s11   ;;  %s672_s10 = sphi %s708_s10, %s886_s10   ;;  %s668_s9 = sphi %s706_s9, %s885_s9  }
   0x5   : > { %s27_s17 = sadd.s32 1, %s684_s13  ;;  %s85_s18 = sadd.s32 1, %s676_s11 }
   0x6   : > { %p29_p0 = scmp.ge.s32.totalorder %s27_s17, 2  ;;  %p95_p1 = scmp.ne.s32.totalorder %s676_s11, %s672_s10 }
   0x7   : > { %p96_p2 = scmp.eq.s32.totalorder %s475_s15, 1  ;;  %p101_p3 = scmp.ne.s32.totalorder %s672_s10, %s668_s9 }
   0x8   : > { %s891_s17 = smov (%p29_p0, %s27_s17), 0  ;;  %p102_p5 = scmp.eq.s32.totalorder %s476_s16, 1 }
   0x9   : > { %p746_p4 = por %p96_p2, %p95_p1  ;;  %s80_s20 = ssub.s32 %s684_s13, %s891_s17 }
   0xa   : > { %p479_p6 = scmp.ge.s32.totalorder %s688_s14, 1  ;;  %p83_p7 = scmp.eq.s32.totalorder %s80_s20, 0 }
   0xb   : > { %p753_p8 = por %p102_p5, %p101_p3  ;;  %p136_p9 = scmp.lt.s32.totalorder %s688_s14, 3 }
   0xc   : > { %s759_s22 = scalar_select %p83_p7, %s676_s11, %s85_s18  }
   0xd   : > { %p137_p10 = pnand %p479_p6, %p136_p9 }
   0xe   : > { %p163_p11 = scmp.lt.s32.totalorder (!%p137_p10), %s680_s12, 1  ;;  %s159_s30 = sand.u32 (!%p137_p10), 1, %s672_s10  }
   0xf   : > { %140 = sbr.rel (%p137_p10) target bundleno = 299 (0x12b), region = 28  ;;  %s480_s3 = sshll.u32 (!%p137_p10), %s159_s30, 3 }
  0x10   : > { %s522_s4 = sshll.u32 (!%p137_p10), %s680_s12, 7  ;;  %s161_s5 = scalar_lea.vmem (!%p137_p10), [#allocation2], %s480_s3 }
  0x11   : > { %s399_s6 = sshll.u32 (!%p137_p10), %s161_s5, 4  ;;  %s397_s15 = scalar_lea.hbm (!%p137_p10), %s882_s2, %s522_s4  ;;  %s400_s6 = int_to_ptr.vmem [resolvable:$true] %s399_s6 }
  0x12   : > { %s383_s16 = scalar_lea.sflag (!%p137_p10), [#allocation3], %s159_s30  ;;  %s612_s18 = scalar_lea.vmem (!%p137_p10), %s400_s6, 128 }
  0x13   : > { %p613_p12 = scmp.ne.s32.totalorder (!%p137_p10), %s400_s6, %s612_s18  ;;  %s690_s20 = smov (!%p137_p10), [#allocation2]  }
  0x14   : > { %vm206_vm0 = vcmask 31744   ;;  %v765_v0 = vld [vmem:[%s880_s0] sm:$0xf]  ;;  %s164_s25 = scalar_select %p163_p11, %s680_s12, 1 }
  0x15   : > { %555 = vmatprep.mubr.msk.f32.mxu0 %vm206_vm0, %v765_v0  ;;  %p614_p13 = pnand %p613_p12, %p746_p4  ;;  %s616_s23 = sshll.u32 %s690_s20, 4  ;;  %s617_s23 = int_to_ptr.vmem [resolvable:$false] %s616_s23 }
  0x16   : > { %s521_s26 = sshll.u32 %s164_s25, 8  ;;  %s618_s12 = scalar_lea.vmem %s617_s23, 256 }
  0x17   : > { %s773_s29 = scalar_lea.vmem %s881_s1, %s521_s26  ;;  %p615_p0 = pneg %p614_p13 }
  0x18   : > { %v204_v1 = vld [vmem:[%s773_s29 + $0xf8] sm:$0xff]  ;;  %v203_v3 = vld [vmem:[%s773_s29 + $0xf0] sm:$0xff]  ;;  %v202_v5 = vld [vmem:[%s773_s29 + $0xe8] sm:$0xff]  ;;  %p619_p1 = scmp.lt.s32.totalorder %s400_s6, %s617_s23  ;;  %p620_p2 = scmp.lt.s32.totalorder %s618_s12, %s612_s18 }
  0x19   : > { %v188_v2 = vld [vmem:[%s773_s29 + $0x78] sm:$0xff]  ;;  %523 = vmatprep.subr.msk.mxu0 %vm206_vm0, %v204_v1  ;;  %v187_v4 = vld [vmem:[%s773_s29 + $0x70] sm:$0xff]  ;;  %v186_v6 = vld [vmem:[%s773_s29 + $0x68] sm:$0xff] }
  0x1a   : > { %524 = vmatpush3.xpose.msk.msra.mxu0 %vm206_vm0, %v188_v2  ;;  %v201_v7 = vld [vmem:[%s773_s29 + $0xe0] sm:$0xff]  ;;  %v200_v9 = vld [vmem:[%s773_s29 + $0xd8] sm:$0xff]  ;;  %v199_v11 = vld [vmem:[%s773_s29 + $0xd0] sm:$0xff]  ;;  %p621_p3 = por %p620_p2, %p619_p1 }
  0x1b   : > { %525 = vmatprep.subr.msk.mxu0 %vm206_vm0, %v203_v3  ;;  %v185_v8 = vld [vmem:[%s773_s29 + $0x60] sm:$0xff]  ;;  %v184_v10 = vld [vmem:[%s773_s29 + $0x58] sm:$0xff]  ;;  %v183_v12 = vld [vmem:[%s773_s29 + $0x50] sm:$0xff] }
  0x1c   : > { %v198_v13 = vld [vmem:[%s773_s29 + $0xc8] sm:$0xff]  ;;  %v197_v15 = vld [vmem:[%s773_s29 + $0xc0] sm:$0xff]  ;;  %v196_v17 = vld [vmem:[%s773_s29 + $0xb8] sm:$0xff]  ;;  %p622_p5 = pnand %p621_p3, %p615_p0 }
  0x1d   : > { %v182_v14 = vld [vmem:[%s773_s29 + $0x48] sm:$0xff]  ;;  %v181_v16 = vld [vmem:[%s773_s29 + $0x40] sm:$0xff]  ;;  %v180_v18 = vld [vmem:[%s773_s29 + $0x38] sm:$0xff] }
  0x1e   : > { %526 = vmatpush3.xpose.msk.msra.mxu0 %vm206_vm0, %v187_v4  ;;  %v195_v19 = vld [vmem:[%s773_s29 + $0xb0] sm:$0xff]  ;;  %v194_v21 = vld [vmem:[%s773_s29 + $0xa8] sm:$0xff]  ;;  %v193_v23 = vld [vmem:[%s773_s29 + $0xa0] sm:$0xff] }
  0x1f   : > { %527 = vmatprep.subr.msk.mxu0 %vm206_vm0, %v202_v5  ;;  %v179_v20 = vld [vmem:[%s773_s29 + $0x30] sm:$0xff]  ;;  %v178_v22 = vld [vmem:[%s773_s29 + $0x28] sm:$0xff]  ;;  %v177_v24 = vld [vmem:[%s773_s29 + $0x20] sm:$0xff] }
  0x20   : > { %v192_v25 = vld [vmem:[%s773_s29 + $0x98] sm:$0xff]  ;;  %v191_v27 = vld [vmem:[%s773_s29 + $0x90] sm:$0xff]  ;;  %v190_v29 = vld [vmem:[%s773_s29 + $0x88] sm:$0xff] }
  0x21   : > { %v176_v26 = vld [vmem:[%s773_s29 + $0x18] sm:$0xff]  ;;  %v175_v28 = vld [vmem:[%s773_s29 + $0x10] sm:$0xff]  ;;  %v174_v30 = vld [vmem:[%s773_s29 + $0x8] sm:$0xff] }
  0x22   : > { %528 = vmatpush3.xpose.msk.msra.mxu0 %vm206_vm0, %v186_v6  ;;  %v189_v31 = vld [vmem:[%s773_s29 + $0x80] sm:$0xff] }
  0x23   : > { %529 = vmatprep.subr.msk.mxu0 %vm206_vm0, %v201_v7  ;;  %v173_v32 = vld [vmem:[%s773_s29] sm:$0xff] }
  0x26   : > { %530 = vmatpush3.xpose.msk.msra.mxu0 %vm206_vm0, %v185_v8 }
  0x27   : > { %531 = vmatprep.subr.msk.mxu0 %vm206_vm0, %v200_v9 }
  0x2a   : > { %532 = vmatpush3.xpose.msk.msra.mxu0 %vm206_vm0, %v184_v10 }
  0x2b   : > { %533 = vmatprep.subr.msk.mxu0 %vm206_vm0, %v199_v11 }
  0x2e   : > { %534 = vmatpush3.xpose.msk.msra.mxu0 %vm206_vm0, %v183_v12 }
  0x2f   : > { %535 = vmatprep.subr.msk.mxu0 %vm206_vm0, %v198_v13 }
  0x32   : > { %536 = vmatpush3.xpose.msk.msra.mxu0 %vm206_vm0, %v182_v14 }
  0x33   : > { %537 = vmatprep.subr.msk.mxu0 %vm206_vm0, %v197_v15 }
  0x36   : > { %538 = vmatpush3.xpose.msk.msra.mxu0 %vm206_vm0, %v181_v16 }
  0x37   : > { %539 = vmatprep.subr.msk.mxu0 %vm206_vm0, %v196_v17 }
  0x3a   : > { %540 = vmatpush3.xpose.msk.msra.mxu0 %vm206_vm0, %v180_v18 }
  0x3b   : > { %541 = vmatprep.subr.msk.mxu0 %vm206_vm0, %v195_v19 }
  0x3e   : > { %542 = vmatpush3.xpose.msk.msra.mxu0 %vm206_vm0, %v179_v20 }
  0x3f   : > { %543 = vmatprep.subr.msk.mxu0 %vm206_vm0, %v194_v21 }
  0x42   : > { %544 = vmatpush3.xpose.msk.msra.mxu0 %vm206_vm0, %v178_v22 }
  0x43   : > { %545 = vmatprep.subr.msk.mxu0 %vm206_vm0, %v193_v23 }
  0x46   : > { %546 = vmatpush3.xpose.msk.msra.mxu0 %vm206_vm0, %v177_v24 }
  0x47   : > { %547 = vmatprep.subr.msk.mxu0 %vm206_vm0, %v192_v25 }
  0x4a   : > { %548 = vmatpush3.xpose.msk.msra.mxu0 %vm206_vm0, %v176_v26 }
  0x4b   : > { %549 = vmatprep.subr.msk.mxu0 %vm206_vm0, %v191_v27 }
  0x4e   : > { %550 = vmatpush3.xpose.msk.msra.mxu0 %vm206_vm0, %v175_v28 }
  0x4f   : > { %551 = vmatprep.subr.msk.mxu0 %vm206_vm0, %v190_v29 }
  0x52   : > { %552 = vmatpush3.xpose.msk.msra.mxu0 %vm206_vm0, %v174_v30 }
  0x53   : > { %553 = vmatprep.subr.msk.mxu0 %vm206_vm0, %v189_v31 }
  0x56   : > { %554 = vmatpush3.xpose.msk.msra.mxu0 %vm206_vm0, %v173_v32 }
  0x59   : > { %556 = vmatmul.mubr.msk.f32.vlgmr.msra.gmra.mxu0 %vm206_vm0, %v765_v0 }
 0x119   : > { %v372_v33 = vpop.f32.mrf.mxu0 }
 0x11b   : > { %v374_v34 = vpop.f32.mrf.mxu0 }
 0x11c   : > { %v379_v35 = vcombine.low %v372_v33, %v374_v34 }
 0x11e   : > { %381 = vst [vmem:[%s161_s5] sm:$0xff] %v379_v35 }
 0x11f   : > { %625 = shalt.err (!%p622_p5)
}
 0x120   : > { %s626_s24 = scalar_lea.hbm %s397_s15, 128  ;;  %s630_s27 = scalar_lea.hbm %s882_s2, 256 }
 0x121   : > { %p627_p6 = scmp.ne.s32.totalorder %s397_s15, %s626_s24  ;;  %p631_p10 = scmp.lt.s32.totalorder %s397_s15, %s882_s2 }
 0x122   : > { %p632_p11 = scmp.lt.s32.totalorder %s630_s27, %s626_s24 }
 0x123   : > { %p628_p7 = pnand %p627_p6, %p746_p4 }
 0x124   : > { %p633_p12 = por %p632_p11, %p631_p10 }
 0x125   : > { %p629_p9 = pneg %p628_p7 }
 0x127   : > { %p634_p13 = pnand %p633_p12, %p629_p9 }
 0x129   : > { %637 = shalt.err (!%p634_p13)
}
 0x12a   : > { %557 = dma.vmem_to_hbm [thread:$0]  (%p746_p4), %s400_s6, 128, %s397_s15, %s383_s16  }
 0x12b PF: > { %p563_p0 = scmp.ge.s32.totalorder %s688_s14, 2  ;;  %s411_s30 = sand.u32 1, %s668_s9  }
 0x12c   : > { %s412_s3 = scalar_lea.sflag [#allocation3], %s411_s30 }
 0x12d   : > { %p560_p1 = pnand %p563_p0, %p753_p8 }
 0x12f   : > { %p561_p2 = pneg %p560_p1 }
 0x131   : > { %663 = dma.done.wait (%p561_p2), %s412_s3, 128  }
 0x132   : > { %665 = vsyncadd (%p561_p2), %s412_s3, 4294967168  ;;  %s15_s14 = sadd.s32 1, %s688_s14   ;;  %s885_s9 = smov %s672_s10 }
 0x133   : > { %p12_p3 = scmp.ge.s32.totalorder %s15_s14, 4   ;;  %s886_s10 = smov %s676_s11 }
 0x134   : > { %s887_s11 = smov %s759_s22  ;;  %s888_s12 = smov %s684_s13 }
 0x135   : > { %s889_s13 = smov %s891_s17  ;;  %14 = sbr.rel (!%p12_p3) target bundleno = 4 (0x4), region = 63 }
 0x13a   :  { %417 = vsyncpa [#allocation3], 1 }
 0x13b   :  { %419 = vsyncpa [#allocation3 + $0x1], 1 }

</bundles_post_ra>
